<compile_context>
chip_gen: v5e
topology: v5e:2x2
jax: 0.10.0
libtpu: 0.0.40
codegen_flags: <defaults>
</compile_context>

<pallas_src>
import functools
import math

import jax
import jax.numpy as jnp
from jax.experimental import pallas as pl
from jax.experimental.pallas import tpu as pltpu


_SUB = 8192               # in-kernel sub-chunk width (lanes); bounds f32 temps
_BLOCK_BUDGET = 4 << 20   # target bytes per input block per grid step (~4 MiB)


def _round_up(x, m):
    return ((x + m - 1) // m) * m


def _native_sublane_rows(itemsize):
    # Packed native tiles: (8,128) f32, (16,128) bf16, (32,128) int8/fp8.
    return max(8, 32 // int(itemsize))


def _choose_tn(n, cap):
    """Lane-aligned feature tile; prefer one that divides n (no tail masking)."""
    cap = max(128, (cap // 128) * 128)
    n128 = _round_up(n, 128)
    if n128 <= cap:
        return n128
    lo = max(128, ((cap // 2) // 128) * 128)
    t = cap
    while t >= lo:
        if n % t == 0:
            return t
        t -= 128
    return cap  # fall back: last chunk is tail-masked


def _ncc_kernel(x_ref, y_ref, out_ref, sx, sy, sxx, syy, sxy,
                *, eps, n_true, tn, num_chunks, mask_tail):
    """Grid = (batch_blocks [parallel], n_chunks [arbitrary, reduction]).

    Each step consumes one (TB, TN) tile of x and y in lane-aligned sub-chunks,
    accumulates five per-row moments in VMEM scratch, and on the last N-chunk
    writes the per-row NCC sum into the (TB, 1) output block.
    """
    k = pl.program_id(1)

    @pl.when(k == 0)
    def _init():
        for s in (sx, sy, sxx, syy, sxy):
            s[...] = jnp.zeros_like(s)

    # Static sub-chunk schedule over the TN block (all sizes multiples of 128).
    sub_offs = [(off, min(_SUB, tn - off)) for off in range(0, tn, _SUB)]

    def accum(off, size, col0=None):
        x = x_ref[:, off:off + size].astype(jnp.float32)
        y = y_ref[:, off:off + size].astype(jnp.float32)
        if col0 is not None:
            col = col0 + jax.lax.broadcasted_iota(jnp.int32, x.shape, 1)
            valid = col < n_true
            x = jnp.where(valid, x, 0.0)
            y = jnp.where(valid, y, 0.0)
        sx[...] += jnp.sum(x, axis=1, keepdims=True)
        sy[...] += jnp.sum(y, axis=1, keepdims=True)
        sxx[...] += jnp.sum(x * x, axis=1, keepdims=True)
        syy[...] += jnp.sum(y * y, axis=1, keepdims=True)
        sxy[...] += jnp.sum(x * y, axis=1, keepdims=True)

    if not mask_tail:
        # Steady state: no masking anywhere.
        for off, size in sub_offs:
            accum(off, size)
    else:
        @pl.when(k < num_chunks - 1)
        def _steady():
            for off, size in sub_offs:
                accum(off, size)

        @pl.when(k == num_chunks - 1)
        def _tail():
            base = (num_chunks - 1) * tn
            for off, size in sub_offs:
                start = base + off
                if start >= n_true:
                    break  # entire sub-chunk is padding; contributes nothing
                needs_mask = (start + size) > n_true
                accum(off, size, col0=start if needs_mask else None)

    @pl.when(k == num_chunks - 1)
    def _finalize():
        n = jnp.float32(n_true)
        sum_x = sx[...]
        sum_y = sy[...]
        dev_xy_sum = sxy[...] - sum_x * sum_y / n
        dev_xx_sum = jnp.maximum(sxx[...] - sum_x * sum_x / n, 0.0)
        dev_yy_sum = jnp.maximum(syy[...] - sum_y * sum_y / n, 0.0)
        denom = jnp.sqrt(dev_xx_sum * dev_yy_sum) + eps
        # sum over dim=1 of (xc*yc + eps/N)/denom == (dev_xy_sum + eps)/denom
        out_ref[...] = (dev_xy_sum + eps) / denom


def admir_loss(x, y, *, reduction="mean", eps=1e-8):
    """NCC loss matching Admir_Loss.forward with return_map=False."""
    assert x.shape == y.shape
    b = x.shape[0]
    n = int(math.prod(x.shape[1:]))
    xf = x.reshape(b, n)  # native dtype — cast happens inside the kernel
    yf = y.reshape(b, n)

    itemsize = int(jnp.dtype(x.dtype).itemsize)
    tb0 = _native_sublane_rows(itemsize)            # dtype-aware sublane tile
    tn = _choose_tn(n, max(128, _BLOCK_BUDGET // (tb0 * itemsize)))
    tb = tb0
    if b > tb0:
        # Batch is large: grow TB (multiple of the native sublane tile) so each
        # grid step still streams multiple MiB even when the feature tile is small.
        tb_cap = max(tb0, ((_BLOCK_BUDGET // (tn * itemsize)) // tb0) * tb0)
        tb = max(tb0, min(_round_up(b, tb0), tb_cap))

    nb = (b + tb - 1) // tb
    nk = (n + tn - 1) // tn
    mask_tail = (n % tn) != 0

    kernel = functools.partial(
        _ncc_kernel, eps=float(eps), n_true=n, tn=tn,
        num_chunks=int(nk), mask_tail=mask_tail)

    # VMEM budget: 2 inputs x 2 pipeline buffers x block + slack for f32
    # sub-chunk temporaries / scratch.  Kept well under v7x's 64 MiB physical.
    block_bytes = tb * tn * itemsize
    vmem_limit = int(min(max(4 * block_bytes + (8 << 20), 16 << 20), 48 << 20))

    # TODO(synk): on v7x with b <= TB (nb == 1) the "parallel" batch axis gives
    # megacore nothing to shard; a 2-way core-parallel split of the N reduction
    # emitting partial moments would feed the second TensorCore.
    row = pl.pallas_call(
        kernel,
        out_shape=jax.ShapeDtypeStruct((nb * tb, 1), jnp.float32),
        grid_spec=pltpu.PrefetchScalarGridSpec(
            num_scalar_prefetch=0,
            grid=(nb, nk),                       # reduction axis (N chunks) last
            in_specs=[
                pl.BlockSpec((tb, tn), lambda i, k: (i, k)),
                pl.BlockSpec((tb, tn), lambda i, k: (i, k)),
            ],
            out_specs=pl.BlockSpec((tb, 1), lambda i, k: (i, 0)),
            scratch_shapes=[pltpu.VMEM((tb, 1), jnp.float32)] * 5,
        ),
        compiler_params=pltpu.CompilerParams(
            dimension_semantics=("parallel", "arbitrary"),
            vmem_limit_bytes=vmem_limit,
        ),
        cost_estimate=pl.CostEstimate(
            flops=10 * b * n,
            transcendentals=b,
            bytes_accessed=2 * b * n * itemsize + 4 * nb * tb,
        ),
    )(xf, yf)

    row_sums = row[:b, 0]                        # drop padded batch rows
    if reduction == "mean":
        return jnp.mean(row_sums)
    elif reduction == "sum":
        return jnp.sum(row_sums)
    raise KeyError("unsupported reduction type: %s" % reduction)

    # TODO(synk): return_map=True path (per-element NCC map output) is not
    # wired through the kernel's output specs; the module default is
    # return_map=False, which this implements.


def _reference(x, y, *, reduction="mean", eps=1e-8):
    """Pure-JAX reference mirroring the PyTorch math."""
    b = x.shape[0]
    n = int(math.prod(x.shape[1:]))
    xf = x.reshape(b, n).astype(jnp.float32)
    yf = y.reshape(b, n).astype(jnp.float32)
    xc = xf - jnp.mean(xf, axis=1, keepdims=True)
    yc = yf - jnp.mean(yf, axis=1, keepdims=True)
    dev_xy = xc * yc
    dev_xx_sum = jnp.sum(xc * xc, axis=1, keepdims=True)
    dev_yy_sum = jnp.sum(yc * yc, axis=1, keepdims=True)
    ncc = (dev_xy + eps / n) / (jnp.sqrt(dev_xx_sum * dev_yy_sum) + eps)
    if reduction == "mean":
        return jnp.mean(jnp.sum(ncc, axis=1))
    return jnp.sum(ncc)


if __name__ == "__main__":
    key = jax.random.PRNGKey(0)
    kx, ky = jax.random.split(key)

    # 1) Small NCHW-like f32 input (no tail masking: N = 1024).
    x = jax.random.normal(kx, (2, 4, 16, 16), dtype=jnp.float32)
    y = jax.random.normal(ky, (2, 4, 16, 16), dtype=jnp.float32)
    loss_mean = admir_loss(x, y, reduction="mean", eps=1e-8)
    loss_sum = admir_loss(x, y, reduction="sum", eps=1e-8)
    jax.block_until_ready(loss_mean)
    jax.block_until_ready(loss_sum)
    ref_mean = _reference(x, y, reduction="mean", eps=1e-8)
    ref_sum = _reference(x, y, reduction="sum", eps=1e-8)
    assert jnp.allclose(loss_mean, ref_mean, atol=1e-5, rtol=1e-4), (loss_mean, ref_mean)
    assert jnp.allclose(loss_sum, ref_sum, atol=1e-5, rtol=1e-4), (loss_sum, ref_sum)

    # 2) Odd spatial dims -> exercises the masked-tail path (N = 4551).
    x2 = jax.random.normal(kx, (2, 3, 37, 41), dtype=jnp.float32)
    y2 = jax.random.normal(ky, (2, 3, 37, 41), dtype=jnp.float32)
    loss2 = admir_loss(x2, y2, reduction="mean", eps=1e-8)
    jax.block_until_ready(loss2)
    ref2 = _reference(x2, y2, reduction="mean", eps=1e-8)
    assert jnp.allclose(loss2, ref2, atol=1e-5, rtol=1e-4), (loss2, ref2)

    # 3) bf16 inputs -> exercises the dtype-aware TB=16 native-streaming path.
    x3 = jax.random.normal(kx, (2, 4, 16, 16), dtype=jnp.bfloat16)
    y3 = jax.random.normal(ky, (2, 4, 16, 16), dtype=jnp.bfloat16)
    loss3 = admir_loss(x3, y3, reduction="mean", eps=1e-8)
    jax.block_until_ready(loss3)
    ref3 = _reference(x3, y3, reduction="mean", eps=1e-8)
    assert jnp.allclose(loss3, ref3, atol=1e-4, rtol=1e-3), (loss3, ref3)

    print("KERNEL_OK")
</pallas_src>

<mosaic_0001>
module attributes {stable_mosaic.version = 11 : i64} {
  func.func @_ncc_kernel(%arg0: i32, %arg1: i32, %arg2: memref<8x1024xf32, #tpu.memory_space<vmem>>, %arg3: memref<8x1024xf32, #tpu.memory_space<vmem>>, %arg4: memref<8x1xf32, #tpu.memory_space<vmem>>, %arg5: memref<8x1xf32, #tpu.memory_space<vmem>>, %arg6: memref<8x1xf32, #tpu.memory_space<vmem>>, %arg7: memref<8x1xf32, #tpu.memory_space<vmem>>, %arg8: memref<8x1xf32, #tpu.memory_space<vmem>>, %arg9: memref<8x1xf32, #tpu.memory_space<vmem>>) attributes {dimension_semantics = [#tpu.dimension_semantics<parallel>, #tpu.dimension_semantics<arbitrary>], iteration_bounds = array<i64: 1, 1>, scalar_prefetch = 0 : i64, scratch_operands = 5 : i64, tpu.core_type = #tpu.core_type<tc>, window_params = [{transform_indices = @transform_0, window_bounds = array<i64: 8, 1024>}, {transform_indices = @transform_1, window_bounds = array<i64: 8, 1024>}, {transform_indices = @transform_2, window_bounds = array<i64: 8, 1>}]} {
    %c0_i32 = arith.constant 0 : i32
    %0 = arith.cmpi eq, %arg1, %c0_i32 : i32
    %1 = arith.extui %0 : i1 to i32
    %c0_i32_0 = arith.constant 0 : i32
    %2 = arith.cmpi ne, %1, %c0_i32_0 : i32
    scf.if %2 {
      %cst_30 = arith.constant 0.000000e+00 : f32
      %36 = vector.broadcast %cst_30 : f32 to vector<8x1xf32>
      %c0_31 = arith.constant 0 : index
      %c0_32 = arith.constant 0 : index
      %37 = vector.load %arg5[%c0_31, %c0_32] : memref<8x1xf32, #tpu.memory_space<vmem>>, vector<8x1xf32>
      tpu.vector_store %arg5[%c0_31, %c0_32], %36 {strides = array<i32>} : memref<8x1xf32, #tpu.memory_space<vmem>>, vector<8x1xf32>,
      %cst_33 = arith.constant 0.000000e+00 : f32
      %38 = vector.broadcast %cst_33 : f32 to vector<8x1xf32>
      %c0_34 = arith.constant 0 : index
      %c0_35 = arith.constant 0 : index
      %39 = vector.load %arg6[%c0_34, %c0_35] : memref<8x1xf32, #tpu.memory_space<vmem>>, vector<8x1xf32>
      tpu.vector_store %arg6[%c0_34, %c0_35], %38 {strides = array<i32>} : memref<8x1xf32, #tpu.memory_space<vmem>>, vector<8x1xf32>,
      %cst_36 = arith.constant 0.000000e+00 : f32
      %40 = vector.broadcast %cst_36 : f32 to vector<8x1xf32>
      %c0_37 = arith.constant 0 : index
      %c0_38 = arith.constant 0 : index
      %41 = vector.load %arg7[%c0_37, %c0_38] : memref<8x1xf32, #tpu.memory_space<vmem>>, vector<8x1xf32>
      tpu.vector_store %arg7[%c0_37, %c0_38], %40 {strides = array<i32>} : memref<8x1xf32, #tpu.memory_space<vmem>>, vector<8x1xf32>,
      %cst_39 = arith.constant 0.000000e+00 : f32
      %42 = vector.broadcast %cst_39 : f32 to vector<8x1xf32>
      %c0_40 = arith.constant 0 : index
      %c0_41 = arith.constant 0 : index
      %43 = vector.load %arg8[%c0_40, %c0_41] : memref<8x1xf32, #tpu.memory_space<vmem>>, vector<8x1xf32>
      tpu.vector_store %arg8[%c0_40, %c0_41], %42 {strides = array<i32>} : memref<8x1xf32, #tpu.memory_space<vmem>>, vector<8x1xf32>,
      %cst_42 = arith.constant 0.000000e+00 : f32
      %44 = vector.broadcast %cst_42 : f32 to vector<8x1xf32>
      %c0_43 = arith.constant 0 : index
      %c0_44 = arith.constant 0 : index
      %45 = vector.load %arg9[%c0_43, %c0_44] : memref<8x1xf32, #tpu.memory_space<vmem>>, vector<8x1xf32>
      tpu.vector_store %arg9[%c0_43, %c0_44], %44 {strides = array<i32>} : memref<8x1xf32, #tpu.memory_space<vmem>>, vector<8x1xf32>,
    } else {
    }
    %c0 = arith.constant 0 : index
    %c0_1 = arith.constant 0 : index
    %3 = vector.load %arg2[%c0, %c0_1] : memref<8x1024xf32, #tpu.memory_space<vmem>>, vector<8x1024xf32>
    %c0_2 = arith.constant 0 : index
    %c0_3 = arith.constant 0 : index
    %4 = vector.load %arg3[%c0_2, %c0_3] : memref<8x1024xf32, #tpu.memory_space<vmem>>, vector<8x1024xf32>
    %c0_4 = arith.constant 0 : index
    %c0_5 = arith.constant 0 : index
    %5 = vector.load %arg5[%c0_4, %c0_5] : memref<8x1xf32, #tpu.memory_space<vmem>>, vector<8x1xf32>
    %cst = arith.constant dense<0.000000e+00> : vector<8xf32>
    %6 = vector.multi_reduction <add>, %3, %cst [1] : vector<8x1024xf32> to vector<8xf32>
    %7 = vector.shape_cast %6 : vector<8xf32> to vector<8x1xf32>
    %8 = arith.addf %5, %7 : vector<8x1xf32>
    %c0_6 = arith.constant 0 : index
    %c0_7 = arith.constant 0 : index
    %9 = vector.load %arg5[%c0_6, %c0_7] : memref<8x1xf32, #tpu.memory_space<vmem>>, vector<8x1xf32>
    tpu.vector_store %arg5[%c0_6, %c0_7], %8 {strides = array<i32>} : memref<8x1xf32, #tpu.memory_space<vmem>>, vector<8x1xf32>,
    %c0_8 = arith.constant 0 : index
    %c0_9 = arith.constant 0 : index
    %10 = vector.load %arg6[%c0_8, %c0_9] : memref<8x1xf32, #tpu.memory_space<vmem>>, vector<8x1xf32>
    %cst_10 = arith.constant dense<0.000000e+00> : vector<8xf32>
    %11 = vector.multi_reduction <add>, %4, %cst_10 [1] : vector<8x1024xf32> to vector<8xf32>
    %12 = vector.shape_cast %11 : vector<8xf32> to vector<8x1xf32>
    %13 = arith.addf %10, %12 : vector<8x1xf32>
    %c0_11 = arith.constant 0 : index
    %c0_12 = arith.constant 0 : index
    %14 = vector.load %arg6[%c0_11, %c0_12] : memref<8x1xf32, #tpu.memory_space<vmem>>, vector<8x1xf32>
    tpu.vector_store %arg6[%c0_11, %c0_12], %13 {strides = array<i32>} : memref<8x1xf32, #tpu.memory_space<vmem>>, vector<8x1xf32>,
    %c0_13 = arith.constant 0 : index
    %c0_14 = arith.constant 0 : index
    %15 = vector.load %arg7[%c0_13, %c0_14] : memref<8x1xf32, #tpu.memory_space<vmem>>, vector<8x1xf32>
    %16 = arith.mulf %3, %3 : vector<8x1024xf32>
    %cst_15 = arith.constant dense<0.000000e+00> : vector<8xf32>
    %17 = vector.multi_reduction <add>, %16, %cst_15 [1] : vector<8x1024xf32> to vector<8xf32>
    %18 = vector.shape_cast %17 : vector<8xf32> to vector<8x1xf32>
    %19 = arith.addf %15, %18 : vector<8x1xf32>
    %c0_16 = arith.constant 0 : index
    %c0_17 = arith.constant 0 : index
    %20 = vector.load %arg7[%c0_16, %c0_17] : memref<8x1xf32, #tpu.memory_space<vmem>>, vector<8x1xf32>
    tpu.vector_store %arg7[%c0_16, %c0_17], %19 {strides = array<i32>} : memref<8x1xf32, #tpu.memory_space<vmem>>, vector<8x1xf32>,
    %c0_18 = arith.constant 0 : index
    %c0_19 = arith.constant 0 : index
    %21 = vector.load %arg8[%c0_18, %c0_19] : memref<8x1xf32, #tpu.memory_space<vmem>>, vector<8x1xf32>
    %22 = arith.mulf %4, %4 : vector<8x1024xf32>
    %cst_20 = arith.constant dense<0.000000e+00> : vector<8xf32>
    %23 = vector.multi_reduction <add>, %22, %cst_20 [1] : vector<8x1024xf32> to vector<8xf32>
    %24 = vector.shape_cast %23 : vector<8xf32> to vector<8x1xf32>
    %25 = arith.addf %21, %24 : vector<8x1xf32>
    %c0_21 = arith.constant 0 : index
    %c0_22 = arith.constant 0 : index
    %26 = vector.load %arg8[%c0_21, %c0_22] : memref<8x1xf32, #tpu.memory_space<vmem>>, vector<8x1xf32>
    tpu.vector_store %arg8[%c0_21, %c0_22], %25 {strides = array<i32>} : memref<8x1xf32, #tpu.memory_space<vmem>>, vector<8x1xf32>,
    %c0_23 = arith.constant 0 : index
    %c0_24 = arith.constant 0 : index
    %27 = vector.load %arg9[%c0_23, %c0_24] : memref<8x1xf32, #tpu.memory_space<vmem>>, vector<8x1xf32>
    %28 = arith.mulf %3, %4 : vector<8x1024xf32>
    %cst_25 = arith.constant dense<0.000000e+00> : vector<8xf32>
    %29 = vector.multi_reduction <add>, %28, %cst_25 [1] : vector<8x1024xf32> to vector<8xf32>
    %30 = vector.shape_cast %29 : vector<8xf32> to vector<8x1xf32>
    %31 = arith.addf %27, %30 : vector<8x1xf32>
    %c0_26 = arith.constant 0 : index
    %c0_27 = arith.constant 0 : index
    %32 = vector.load %arg9[%c0_26, %c0_27] : memref<8x1xf32, #tpu.memory_space<vmem>>, vector<8x1xf32>
    tpu.vector_store %arg9[%c0_26, %c0_27], %31 {strides = array<i32>} : memref<8x1xf32, #tpu.memory_space<vmem>>, vector<8x1xf32>,
    %c0_i32_28 = arith.constant 0 : i32
    %33 = arith.cmpi eq, %arg1, %c0_i32_28 : i32
    %34 = arith.extui %33 : i1 to i32
    %c0_i32_29 = arith.constant 0 : i32
    %35 = arith.cmpi ne, %34, %c0_i32_29 : i32
    scf.if %35 {
      %c0_30 = arith.constant 0 : index
      %c0_31 = arith.constant 0 : index
      %36 = vector.load %arg5[%c0_30, %c0_31] : memref<8x1xf32, #tpu.memory_space<vmem>>, vector<8x1xf32>
      %c0_32 = arith.constant 0 : index
      %c0_33 = arith.constant 0 : index
      %37 = vector.load %arg6[%c0_32, %c0_33] : memref<8x1xf32, #tpu.memory_space<vmem>>, vector<8x1xf32>
      %c0_34 = arith.constant 0 : index
      %c0_35 = arith.constant 0 : index
      %38 = vector.load %arg9[%c0_34, %c0_35] : memref<8x1xf32, #tpu.memory_space<vmem>>, vector<8x1xf32>
      %39 = arith.mulf %36, %37 : vector<8x1xf32>
      %cst_36 = arith.constant 1.024000e+03 : f32
      %40 = vector.broadcast %cst_36 : f32 to vector<8x1xf32>
      %41 = arith.divf %39, %40 : vector<8x1xf32>
      %42 = arith.subf %38, %41 : vector<8x1xf32>
      %c0_37 = arith.constant 0 : index
      %c0_38 = arith.constant 0 : index
      %43 = vector.load %arg7[%c0_37, %c0_38] : memref<8x1xf32, #tpu.memory_space<vmem>>, vector<8x1xf32>
      %44 = arith.mulf %36, %36 : vector<8x1xf32>
      %cst_39 = arith.constant 1.024000e+03 : f32
      %45 = vector.broadcast %cst_39 : f32 to vector<8x1xf32>
      %46 = arith.divf %44, %45 : vector<8x1xf32>
      %47 = arith.subf %43, %46 : vector<8x1xf32>
      %cst_40 = arith.constant 0.000000e+00 : f32
      %48 = vector.broadcast %cst_40 : f32 to vector<8x1xf32>
      %49 = arith.maximumf %47, %48 : vector<8x1xf32>
      %c0_41 = arith.constant 0 : index
      %c0_42 = arith.constant 0 : index
      %50 = vector.load %arg8[%c0_41, %c0_42] : memref<8x1xf32, #tpu.memory_space<vmem>>, vector<8x1xf32>
      %51 = arith.mulf %37, %37 : vector<8x1xf32>
      %cst_43 = arith.constant 1.024000e+03 : f32
      %52 = vector.broadcast %cst_43 : f32 to vector<8x1xf32>
      %53 = arith.divf %51, %52 : vector<8x1xf32>
      %54 = arith.subf %50, %53 : vector<8x1xf32>
      %cst_44 = arith.constant 0.000000e+00 : f32
      %55 = vector.broadcast %cst_44 : f32 to vector<8x1xf32>
      %56 = arith.maximumf %54, %55 : vector<8x1xf32>
      %57 = arith.mulf %49, %56 : vector<8x1xf32>
      %58 = math.sqrt %57 : vector<8x1xf32>
      %cst_45 = arith.constant 9.99999993E-9 : f32
      %59 = vector.broadcast %cst_45 : f32 to vector<8x1xf32>
      %60 = arith.addf %58, %59 : vector<8x1xf32>
      %cst_46 = arith.constant 9.99999993E-9 : f32
      %61 = vector.broadcast %cst_46 : f32 to vector<8x1xf32>
      %62 = arith.addf %42, %61 : vector<8x1xf32>
      %63 = arith.divf %62, %60 : vector<8x1xf32>
      %c0_47 = arith.constant 0 : index
      %c0_48 = arith.constant 0 : index
      %64 = vector.load %arg4[%c0_47, %c0_48] : memref<8x1xf32, #tpu.memory_space<vmem>>, vector<8x1xf32>
      tpu.vector_store %arg4[%c0_47, %c0_48], %63 {strides = array<i32>} : memref<8x1xf32, #tpu.memory_space<vmem>>, vector<8x1xf32>,
    } else {
    }
    return
  }
  func.func @transform_0(%arg0: i32, %arg1: i32) -> (i32, i32) {
    %c0_i32 = arith.constant 0 : i32
    return %arg0, %arg1 : i32, i32
  }
  func.func @transform_1(%arg0: i32, %arg1: i32) -> (i32, i32) {
    %c0_i32 = arith.constant 0 : i32
    return %arg0, %arg1 : i32, i32
  }
  func.func @transform_2(%arg0: i32, %arg1: i32) -> (i32, i32) {
    %c0_i32 = arith.constant 0 : i32
    %c0_i32_0 = arith.constant 0 : i32
    return %arg0, %c0_i32 : i32, i32
  }
}

</mosaic_0001>

<bundles_post_ra>
// kernel: tpu_custom_call.1
= control target key start
LH: loop header
LB: loop body
LE: loop exit
PB: predicated region body
PF: predicated region fallthrough
CT: control target
= control target key end

     0   :  { %7 = vsyncpa [#allocation8], 0  ;;  %s613_s0 = inlined_call_operand.hbm [shape: f32[2,1024], index: 0, kind: input, shape index: {}]   ;;  %s614_s1 = inlined_call_operand.hbm [shape: f32[2,1024], index: 1, kind: input, shape index: {}]   ;;  %s615_s2 = inlined_call_operand.vmem [shape: f32[8,1], index: 2, kind: output, shape index: {}]  }
   0x1   :  { %8 = vsyncpa [#allocation10], 0 }
   0x2   :  { %12 = vsyncadd [#allocation8], 768  ;;  %s13_s11 = sshll.u32 %s613_s0, 4  ;;  %s476_s12 = smov [#allocation7]   ;;  %s14_s11 = int_to_ptr.hbm [resolvable:$true] %s13_s11 }
   0x3   :  { %s15_s13 = sshll.u32 %s476_s12, 4  ;;  %s477_s14 = smov 256   ;;  %s16_s13 = int_to_ptr.vmem [resolvable:$true] %s15_s13 }
   0x4   :  { %s478_s15 = smov 16  }
   0x5   :  { %21 = dma.hbm_to_vmem [thread:$0]  %s14_s11, 256, %s16_s13, [#allocation8], %s477_s14, %s477_s14, %s478_s15  }
   0x6   :  { %25 = vsyncadd [#allocation10], 768  ;;  %s26_s18 = sshll.u32 %s614_s1, 4  ;;  %s479_s19 = smov [#allocation9]   ;;  %s27_s18 = int_to_ptr.hbm [resolvable:$true] %s26_s18 }
   0x7   :  { %s28_s20 = sshll.u32 %s479_s19, 4  ;;  %s29_s20 = int_to_ptr.vmem [resolvable:$true] %s28_s20 }
   0x8   :  { %34 = dma.hbm_to_vmem [thread:$0]  %s27_s18, 256, %s29_s20, [#allocation10], %s477_s14, %s477_s14, %s478_s15  }
   0x9   :  { %472 = dma.done.wait [#allocation8], 1024  }
   0xa   :  { %473 = vsyncadd [#allocation8], 4294966272 }
   0xb   :  { %474 = dma.done.wait [#allocation10], 1024  }
   0xc   :  { %475 = vsyncadd [#allocation10], 4294966272  ;;  %v503_v0 = vld [vmem:[#allocation7] sm:$0xff]  ;;  %v505_v1 = vld [vmem:[#allocation7 + $0x10] sm:$0xff]  ;;  %vm47_vm0 = vcmask 7168  }
   0xd   :  { %v507_v2 = vld [vmem:[#allocation7 + $0x20] sm:$0xff]  ;;  %78 = vst [vmem:[#allocation1] ss:$4 sm:$0xff] %v503_v0  ;;  %v510_v3 = vld [vmem:[#allocation7 + $0x8] sm:$0xff]  ;;  %v512_v4 = vld [vmem:[#allocation7 + $0x30] sm:$0xff]  ;;  %v173_v30 = vmul.f32 %v503_v0, %v503_v0  ;;  %v175_v32 = vmul.f32 %v505_v1, %v505_v1 }
   0xe   :  { %80 = vst [vmem:[#allocation1 + $0x1] ss:$4 sm:$0xff] %v505_v1  ;;  %v515_v5 = vld [vmem:[#allocation7 + $0x18] sm:$0xff]  ;;  %v518_v6 = vld [vmem:[#allocation7 + $0x28] sm:$0xff]  ;;  %v527_v8 = vld [vmem:[#allocation9] sm:$0xff]  ;;  %v177_v38 = vmul.f32 %v507_v2, %v507_v2  ;;  %v179_v39 = vmul.f32 %v512_v4, %v512_v4  ;;  %v174_v41 = vmul.f32 %v510_v3, %v510_v3 }
   0xf   :  { %82 = vst [vmem:[#allocation1 + $0x2] ss:$4 sm:$0xff] %v507_v2  ;;  %v521_v7 = vld [vmem:[#allocation7 + $0x38] sm:$0xff]  ;;  %v529_v9 = vld [vmem:[#allocation9 + $0x10] sm:$0xff]  ;;  %v532_v16 = vld [vmem:[#allocation9 + $0x8] sm:$0xff]  ;;  %v176_v44 = vmul.f32 %v515_v5, %v515_v5  ;;  %v178_v48 = vmul.f32 %v518_v6, %v518_v6  ;;  %v232_v53 = vmul.f32 %v527_v8, %v527_v8 }
  0x10   :  { %84 = vst [vmem:[#allocation1 + $0x3] ss:$4 sm:$0xff] %v512_v4  ;;  %v534_v17 = vld [vmem:[#allocation9 + $0x20] sm:$0xff]  ;;  %v536_v18 = vld [vmem:[#allocation9 + $0x30] sm:$0xff]  ;;  %v539_v24 = vld [vmem:[#allocation9 + $0x18] sm:$0xff]  ;;  %v180_v49 = vmul.f32 %v521_v7, %v521_v7  ;;  %v234_v55 = vmul.f32 %v529_v9, %v529_v9 }
  0x11   :  { %86 = vst [vmem:[#allocation1 + $0x20] ss:$4 sm:$0xff] %v510_v3  ;;  %v542_v26 = vld [vmem:[#allocation9 + $0x28] sm:$0xff]  ;;  %v545_v27 = vld [vmem:[#allocation9 + $0x38] sm:$0xff]  ;;  %v236_v61 = vmul.f32 %v534_v17, %v534_v17  ;;  %v238_v62 = vmul.f32 %v536_v18, %v536_v18 }
  0x12   :  { %88 = vst [vmem:[#allocation1 + $0x21] ss:$4 sm:$0xff] %v515_v5 }
  0x13   :  { %90 = vst [vmem:[#allocation1 + $0x22] ss:$4 sm:$0xff] %v518_v6 }
  0x14   :  { %92 = vst [vmem:[#allocation1 + $0x23] ss:$4 sm:$0xff] %v521_v7 }
  0x17   :  { %v93_v10 = vld.sshfl [vmem:[#allocation1] sm:$0xff pattern:$0x73625140]  ;;  %v94_v11 = vld.sshfl [vmem:[#allocation1 + $0x8] sm:$0xff pattern:$0x73625140] }
  0x18   :  { %v95_v12 = vld.sshfl [vmem:[#allocation1 + $0x10] sm:$0xff pattern:$0x73625140]  ;;  %v96_v13 = vld.sshfl [vmem:[#allocation1 + $0x18] sm:$0xff pattern:$0x73625140]  ;;  %v109_v14 = vadd.f32 %v94_v11, %v93_v10  ;;  %v233_v10 = vmul.f32 %v532_v16, %v532_v16 }
  0x19   :  { %130 = vst [vmem:[#allocation1] ss:$4 sm:$0xff] %v527_v8 }
  0x1a   :  { %v110_v15 = vadd.f32 %v109_v14, %v95_v12  ;;  %132 = vst [vmem:[#allocation1 + $0x1] ss:$4 sm:$0xff] %v529_v9 }
  0x1b   :  { %v97_v19 = vld.sshfl [vmem:[#allocation1 + $0x20] sm:$0xff pattern:$0x73625140]  ;;  %v98_v20 = vld.sshfl [vmem:[#allocation1 + $0x28] sm:$0xff pattern:$0x73625140] }
  0x1c   :  { %v99_v21 = vld.sshfl [vmem:[#allocation1 + $0x30] sm:$0xff pattern:$0x73625140]  ;;  %v100_v22 = vld.sshfl [vmem:[#allocation1 + $0x38] sm:$0xff pattern:$0x73625140]  ;;  %v111_v23 = vadd.f32 %v110_v15, %v96_v13  ;;  %v235_v13 = vmul.f32 %v539_v24, %v539_v24 }
  0x1d   :  { %134 = vst [vmem:[#allocation1 + $0x2] ss:$4 sm:$0xff] %v534_v17 }
  0x1e   :  { %v112_v25 = vadd.f32 %v111_v23, %v97_v19  ;;  %136 = vst [vmem:[#allocation1 + $0x3] ss:$4 sm:$0xff] %v536_v18 }
  0x1f   :  { %138 = vst [vmem:[#allocation1 + $0x20] ss:$4 sm:$0xff] %v532_v16 }
  0x20   :  { %v113_v28 = vadd.f32 %v112_v25, %v98_v20  ;;  %140 = vst [vmem:[#allocation1 + $0x21] ss:$4 sm:$0xff] %v539_v24  ;;  %v237_v20 = vmul.f32 %v542_v26, %v542_v26 }
  0x21   :  { %142 = vst [vmem:[#allocation1 + $0x22] ss:$4 sm:$0xff] %v542_v26 }
  0x22   :  { %v114_v29 = vadd.f32 %v113_v28, %v99_v21  ;;  %144 = vst [vmem:[#allocation1 + $0x23] ss:$4 sm:$0xff] %v545_v27  ;;  %v239_v21 = vmul.f32 %v545_v27, %v545_v27  ;;  %v291_v28 = vmul.f32 %v527_v8, %v503_v0  ;;  %v297_v0 = vmul.f32 %v536_v18, %v512_v4 }
  0x23   :  { %v298_v4 = vmul.f32 %v545_v27, %v521_v7 }
  0x24   :  { %v115_v31 = vadd.f32 %v114_v29, %v100_v22  ;;  %v480_v29 = vmov 0.0  }
  0x25   :  { %v145_v33 = vld.sshfl [vmem:[#allocation1] sm:$0xff pattern:$0x73625140]  ;;  %v146_v34 = vld.sshfl [vmem:[#allocation1 + $0x8] sm:$0xff pattern:$0x73625140] }
  0x26   :  { %116 = vadd.xlane.f32.xlu0 %v115_v31  ;;  %v147_v35 = vld.sshfl [vmem:[#allocation1 + $0x10] sm:$0xff pattern:$0x73625140]  ;;  %v148_v36 = vld.sshfl [vmem:[#allocation1 + $0x18] sm:$0xff pattern:$0x73625140]  ;;  %v161_v37 = vadd.f32 %v146_v34, %v145_v33 }
  0x27   :  { %189 = vst [vmem:[#allocation1] ss:$4 sm:$0xff] %v173_v30  ;;  %v293_v30 = vmul.f32 %v529_v9, %v505_v1  ;;  %v292_v1 = vmul.f32 %v532_v16, %v510_v3 }
  0x28   :  { %v162_v40 = vadd.f32 %v161_v37, %v147_v35  ;;  %191 = vst [vmem:[#allocation1 + $0x1] ss:$4 sm:$0xff] %v175_v32  ;;  %v295_v37 = vmul.f32 %v534_v17, %v507_v2  ;;  %v296_v2 = vmul.f32 %v542_v26, %v518_v6 }
  0x29   :  { %v149_v42 = vld.sshfl [vmem:[#allocation1 + $0x20] sm:$0xff pattern:$0x73625140]  ;;  %v150_v43 = vld.sshfl [vmem:[#allocation1 + $0x28] sm:$0xff pattern:$0x73625140] }
  0x2a   :  { %v151_v45 = vld.sshfl [vmem:[#allocation1 + $0x30] sm:$0xff pattern:$0x73625140]  ;;  %v152_v46 = vld.sshfl [vmem:[#allocation1 + $0x38] sm:$0xff pattern:$0x73625140]  ;;  %v163_v47 = vadd.f32 %v162_v40, %v148_v36 }
  0x2b   :  { %193 = vst [vmem:[#allocation1 + $0x2] ss:$4 sm:$0xff] %v177_v38 }
  0x2c   :  { %v164_v50 = vadd.f32 %v163_v47, %v149_v42  ;;  %195 = vst [vmem:[#allocation1 + $0x3] ss:$4 sm:$0xff] %v179_v39  ;;  %v294_v39 = vmul.f32 %v539_v24, %v515_v5 }
  0x2d   :  { %197 = vst [vmem:[#allocation1 + $0x20] ss:$4 sm:$0xff] %v174_v41 }
  0x2e   :  { %v165_v51 = vadd.f32 %v164_v50, %v150_v43  ;;  %199 = vst [vmem:[#allocation1 + $0x21] ss:$4 sm:$0xff] %v176_v44 }
  0x2f   :  { %201 = vst [vmem:[#allocation1 + $0x22] ss:$4 sm:$0xff] %v178_v48 }
  0x30   :  { %v166_v52 = vadd.f32 %v165_v51, %v151_v45  ;;  %203 = vst [vmem:[#allocation1 + $0x23] ss:$4 sm:$0xff] %v180_v49 }
  0x31   :  { %48 = vst.msk [vmem:[#allocation2] sm:$0xff] %vm47_vm0, %v480_v29 }
  0x32   :  { %v167_v54 = vadd.f32 %v166_v52, %v152_v46  ;;  %49 = vst.msk [vmem:[#allocation3] sm:$0xff] %vm47_vm0, %v480_v29 }
  0x33   :  { %v204_v56 = vld.sshfl [vmem:[#allocation1] sm:$0xff pattern:$0x73625140]  ;;  %v205_v57 = vld.sshfl [vmem:[#allocation1 + $0x8] sm:$0xff pattern:$0x73625140] }
  0x34   :  { %168 = vadd.xlane.f32.xlu0 %v167_v54  ;;  %v206_v58 = vld.sshfl [vmem:[#allocation1 + $0x10] sm:$0xff pattern:$0x73625140]  ;;  %v207_v59 = vld.sshfl [vmem:[#allocation1 + $0x18] sm:$0xff pattern:$0x73625140]  ;;  %v220_v60 = vadd.f32 %v205_v57, %v204_v56 }
  0x35   :  { %248 = vst [vmem:[#allocation1] ss:$4 sm:$0xff] %v232_v53 }
  0x36   :  { %v221_v63 = vadd.f32 %v220_v60, %v206_v58  ;;  %250 = vst [vmem:[#allocation1 + $0x1] ss:$4 sm:$0xff] %v234_v55  ;;  %v481_v58 = vmov 1024.0  }
  0x37   :  { %v208_v11 = vld.sshfl [vmem:[#allocation1 + $0x20] sm:$0xff pattern:$0x73625140]  ;;  %v209_v12 = vld.sshfl [vmem:[#allocation1 + $0x28] sm:$0xff pattern:$0x73625140]  ;;  %418 = vrcp.f32 %v481_v58 }
  0x38   :  { %v210_v14 = vld.sshfl [vmem:[#allocation1 + $0x30] sm:$0xff pattern:$0x73625140]  ;;  %v211_v15 = vld.sshfl [vmem:[#allocation1 + $0x38] sm:$0xff pattern:$0x73625140]  ;;  %v222_v19 = vadd.f32 %v221_v63, %v207_v59 }
  0x39   :  { %252 = vst [vmem:[#allocation1 + $0x2] ss:$4 sm:$0xff] %v236_v61  ;;  %v69_v52 = vld [vmem:[#allocation2] sm:$0xff]  ;;  %v121_v55 = vld [vmem:[#allocation3] sm:$0xff] }
  0x3a   :  { %v223_v22 = vadd.f32 %v222_v19, %v208_v11  ;;  %254 = vst [vmem:[#allocation1 + $0x3] ss:$4 sm:$0xff] %v238_v62 }
  0x3b   :  { %256 = vst [vmem:[#allocation1 + $0x20] ss:$4 sm:$0xff] %v233_v10 }
  0x3c   :  { %v224_v23 = vadd.f32 %v223_v22, %v209_v12  ;;  %258 = vst [vmem:[#allocation1 + $0x21] ss:$4 sm:$0xff] %v235_v13 }
  0x3d   :  { %260 = vst [vmem:[#allocation1 + $0x22] ss:$4 sm:$0xff] %v237_v20  ;;  %v419_v59 = vpop.eup %418 }
  0x3e   :  { %v225_v25 = vadd.f32 %v224_v23, %v210_v14  ;;  %262 = vst [vmem:[#allocation1 + $0x23] ss:$4 sm:$0xff] %v239_v21  ;;  %v357_v61 = vmul.f32 1024.0, %v419_v59  ;;  %vm361_vm1 = vweird.f32 %v419_v59 }
  0x3f   :  { %50 = vst.msk [vmem:[#allocation4] sm:$0xff] %vm47_vm0, %v480_v29 }
  0x40   :  { %v226_v31 = vadd.f32 %v225_v25, %v211_v15  ;;  %51 = vst.msk [vmem:[#allocation5] sm:$0xff] %vm47_vm0, %v480_v29  ;;  %v358_v10 = vsub.f32 1.0, %v357_v61 }
  0x41   :  { %v263_v32 = vld.sshfl [vmem:[#allocation1] sm:$0xff pattern:$0x73625140]  ;;  %v264_v33 = vld.sshfl [vmem:[#allocation1 + $0x8] sm:$0xff pattern:$0x73625140] }
  0x42   :  { %227 = vadd.xlane.f32.xlu1 %v226_v31  ;;  %v265_v34 = vld.sshfl [vmem:[#allocation1 + $0x10] sm:$0xff pattern:$0x73625140]  ;;  %v266_v35 = vld.sshfl [vmem:[#allocation1 + $0x18] sm:$0xff pattern:$0x73625140]  ;;  %v279_v36 = vadd.f32 %v264_v33, %v263_v32  ;;  %v359_v11 = vmul.f32 %v419_v59, %v358_v10 }
  0x43   :  { %307 = vst [vmem:[#allocation1] ss:$4 sm:$0xff] %v291_v28 }
  0x44   :  { %v280_v8 = vadd.f32 %v279_v36, %v265_v34  ;;  %309 = vst [vmem:[#allocation1 + $0x1] ss:$4 sm:$0xff] %v293_v30  ;;  %v360_v13 = vadd.f32 %v419_v59, %v359_v11 }
  0x45   :  { %v267_v9 = vld.sshfl [vmem:[#allocation1 + $0x20] sm:$0xff pattern:$0x73625140]  ;;  %v268_v38 = vld.sshfl [vmem:[#allocation1 + $0x28] sm:$0xff pattern:$0x73625140] }
  0x46   :  { %v269_v40 = vld.sshfl [vmem:[#allocation1 + $0x30] sm:$0xff pattern:$0x73625140]  ;;  %v270_v41 = vld.sshfl [vmem:[#allocation1 + $0x38] sm:$0xff pattern:$0x73625140]  ;;  %v281_v42 = vadd.f32 %v280_v8, %v266_v35  ;;  %v362_v22 = vsel %vm361_vm1, %v419_v59, %v360_v13 }
  0x47   :  { %311 = vst [vmem:[#allocation1 + $0x2] ss:$4 sm:$0xff] %v295_v37  ;;  %v172_v60 = vld [vmem:[#allocation4] sm:$0xff]  ;;  %v231_v14 = vld [vmem:[#allocation5] sm:$0xff] }
  0x48   :  { %v282_v17 = vadd.f32 %v281_v42, %v267_v9  ;;  %313 = vst [vmem:[#allocation1 + $0x3] ss:$4 sm:$0xff] %v297_v0 }
  0x49   :  { %315 = vst [vmem:[#allocation1 + $0x20] ss:$4 sm:$0xff] %v292_v1 }
  0x4a   :  { %v283_v18 = vadd.f32 %v282_v17, %v268_v38  ;;  %317 = vst [vmem:[#allocation1 + $0x21] ss:$4 sm:$0xff] %v294_v39 }
  0x4b   :  { %319 = vst [vmem:[#allocation1 + $0x22] ss:$4 sm:$0xff] %v296_v2 }
  0x4c   :  { %v284_v3 = vadd.f32 %v283_v18, %v269_v40  ;;  %321 = vst [vmem:[#allocation1 + $0x23] ss:$4 sm:$0xff] %v298_v4 }
  0x4d   :  { %52 = vst.msk [vmem:[#allocation6] sm:$0xff] %vm47_vm0, %v480_v29 }
  0x4e   :  { %v285_v5 = vadd.f32 %v284_v3, %v270_v41 }
  0x4f   :  { %v322_v16 = vld.sshfl [vmem:[#allocation1] sm:$0xff pattern:$0x73625140]  ;;  %v323_v24 = vld.sshfl [vmem:[#allocation1 + $0x8] sm:$0xff pattern:$0x73625140] }
  0x50   :  { %286 = vadd.xlane.f32.xlu1 %v285_v5  ;;  %v324_v6 = vld.sshfl [vmem:[#allocation1 + $0x10] sm:$0xff pattern:$0x73625140]  ;;  %v338_v26 = vadd.f32 %v323_v24, %v322_v16  ;;  %v325_v43 = vld.sshfl [vmem:[#allocation1 + $0x18] sm:$0xff pattern:$0x73625140] }
  0x52   :  { %v339_v7 = vadd.f32 %v338_v26, %v324_v6 }
  0x53   :  { %v326_v27 = vld.sshfl [vmem:[#allocation1 + $0x20] sm:$0xff pattern:$0x73625140]  ;;  %v327_v45 = vld.sshfl [vmem:[#allocation1 + $0x28] sm:$0xff pattern:$0x73625140] }
  0x54   :  { %v340_v44 = vadd.f32 %v339_v7, %v325_v43  ;;  %v328_v47 = vld.sshfl [vmem:[#allocation1 + $0x30] sm:$0xff pattern:$0x73625140]  ;;  %v329_v49 = vld.sshfl [vmem:[#allocation1 + $0x38] sm:$0xff pattern:$0x73625140] }
  0x55   :  { %v290_v33 = vld [vmem:[#allocation6] sm:$0xff] }
  0x56   :  { %v341_v46 = vadd.f32 %v340_v44, %v326_v27 }
  0x58   :  { %v342_v48 = vadd.f32 %v341_v46, %v327_v45 }
  0x5a   :  { %v343_v50 = vadd.f32 %v342_v48, %v328_v47 }
  0x5c   :  { %v344_v51 = vadd.f32 %v343_v50, %v329_v49 }
  0x5e   :  { %345 = vadd.xlane.f32.xlu2 %v344_v51 }
  0x99   :  { %v117_v53 = vpop.xlane.xlu0 %116 }
  0x9a   :  { %v118_v54 = vadd.f32 %v117_v53, %v69_v52 }
  0x9c   :  { %120 = vst.msk [vmem:[#allocation2] sm:$0xff] %vm47_vm0, %v118_v54 }
  0xa3   :  { %v352_v12 = vld [vmem:[#allocation2] sm:$0xff] }
  0xa4   :  { %v366_v19 = vmul.f32 %v352_v12, %v352_v12 }
  0xa6   :  { %v367_v25 = vmul.f32 %v366_v19, %v362_v22 }
  0xa7   :  { %v169_v56 = vpop.xlane.xlu0 %168 }
  0xa8   :  { %v170_v57 = vadd.f32 %v169_v56, %v121_v55 }
  0xaa   :  { %171 = vst.msk [vmem:[#allocation3] sm:$0xff] %vm47_vm0, %v170_v57 }
  0xb1   :  { %v353_v21 = vld [vmem:[#allocation3] sm:$0xff] }
  0xb2   :  { %v371_v23 = vmul.f32 %v353_v21, %v353_v21  ;;  %v355_v18 = vmul.f32 %v353_v21, %v352_v12 }
  0xb4   :  { %v372_v29 = vmul.f32 %v371_v23, %v362_v22  ;;  %v363_v24 = vmul.f32 %v362_v22, %v355_v18 }
  0xb5   :  { %v228_v62 = vpop.xlane.xlu1 %227 }
  0xb6   :  { %v229_v63 = vadd.f32 %v228_v62, %v172_v60 }
  0xb8   :  { %230 = vst.msk [vmem:[#allocation4] sm:$0xff] %vm47_vm0, %v229_v63 }
  0xbf   :  { %v365_v28 = vld [vmem:[#allocation4] sm:$0xff] }
  0xc0   :  { %v368_v30 = vsub.f32 %v365_v28, %v367_v25 }
  0xc2   :  { %v369_v34 = vmax.f32 %v368_v30, 0.0 }
  0xc3   :  { %v287_v15 = vpop.xlane.xlu1 %286 }
  0xc4   :  { %v288_v20 = vadd.f32 %v287_v15, %v231_v14 }
  0xc6   :  { %289 = vst.msk [vmem:[#allocation5] sm:$0xff] %vm47_vm0, %v288_v20 }
  0xcd   :  { %v370_v31 = vld [vmem:[#allocation5] sm:$0xff] }
  0xce   :  { %v373_v32 = vsub.f32 %v370_v31, %v372_v29 }
  0xd0   :  { %v374_v35 = vmax.f32 %v373_v32, 0.0 }
  0xd1   :  { %v346_v36 = vpop.xlane.xlu2 %345 }
  0xd2   :  { %v375_v37 = vmul.f32 %v374_v35, %v369_v34  ;;  %v347_v0 = vadd.f32 %v346_v36, %v290_v33 }
  0xd4   :  { %420 = vrsqrt.f32 %v375_v37  ;;  %348 = vst.msk [vmem:[#allocation6] sm:$0xff] %vm47_vm0, %v347_v0  ;;  %vm383_vm2 = vcmp.eq.f32.partialorder %v375_v37, inf  ;;  %v386_v42 = vand.u32 2147483648, %v375_v37  ;;  %vm385_vm3 = vcmp.eq.f32.partialorder %v375_v37, 0.0 }
  0xda   :  { %v421_v8 = vpop.eup %420 }
  0xdb   :  { %v377_v1 = vmul.f32 %v421_v8, %v375_v37  ;;  %v354_v16 = vld [vmem:[#allocation6] sm:$0xff] }
  0xdc   :  { %v364_v43 = vsub.f32 %v354_v16, %v363_v24 }
  0xdd   :  { %v378_v9 = vmul.f32 %v421_v8, %v377_v1 }
  0xde   :  { %v389_v46 = vadd.f32 1e-08, %v364_v43 }
  0xdf   :  { %v379_v38 = vmul.f32 0.5, %v378_v9 }
  0xe1   :  { %v380_v39 = vsub.f32 1.5, %v379_v38 }
  0xe3   :  { %v381_v40 = vmul.f32 %v421_v8, %v380_v39 }
  0xe5   :  { %v382_v41 = vmul.f32 %v381_v40, %v375_v37 }
  0xe7   :  { %v384_v2 = vsel %vm383_vm2, %v375_v37, %v382_v41 }
  0xe8   :  { %v387_v4 = vsel %vm385_vm3, %v386_v42, %v384_v2 }
  0xe9   :  { %v388_v17 = vadd.f32 1e-08, %v387_v4 }
  0xeb   :  { %422 = vrcp.f32 %v388_v17  ;;  %v401_v26 = vand.u32 2147483648, %v388_v17  ;;  %v399_v27 = vand.u32 2147483647, %v388_v17  ;;  %vm395_vm5 = vweird.f32 %v388_v17 }
  0xed   :  { %v402_v45 = vor.u32 1.1754944e-38, %v401_v26  ;;  %vm400_vm7 = vcmp.eq.f32.partialorder %v399_v27, 8.507059e+37 }
  0xf1   :  { %v423_v3 = vpop.eup %422 }
  0xf2   :  { %v391_v5 = vmul.f32 %v423_v3, %v388_v17  ;;  %vm396_vm4 = vweird.f32 %v423_v3 }
  0xf3   :  { %vm397_vm6 = vmor %vm395_vm5, %vm396_vm4 }
  0xf4   :  { %v392_v6 = vsub.f32 1.0, %v391_v5 }
  0xf6   :  { %v393_v7 = vmul.f32 %v423_v3, %v392_v6 }
  0xf8   :  { %v394_v44 = vadd.f32 %v423_v3, %v393_v7 }
  0xfa   :  { %v398_v47 = vsel %vm397_vm6, %v423_v3, %v394_v44 }
  0xfb   :  { %v403_v48 = vsel %vm400_vm7, %v402_v45, %v398_v47 }
  0xfc   :  { %v404_v49 = vmul.f32 %v403_v48, %v389_v46 }
  0xfe   :  { %405 = vst.msk [vmem:[%s615_s2] sm:$0xff] %vm47_vm0, %v404_v49 }
  0xff   :  { %410 = vsyncpa [#allocation8], 1 }
 0x100   :  { %411 = vsyncpa [#allocation10], 1 }

</bundles_post_ra>
